<compile_context>
chip_gen: v5e
topology: v5e:2x2
jax: 0.10.0
libtpu: 0.0.40
codegen_flags: <defaults>
</compile_context>

<pallas_src>
import jax
import jax.numpy as jnp
from jax.experimental import pallas as pl
from jax.experimental.pallas import tpu as pltpu


def _gap_kernel(x_ref, w1_ref, b1_ref, w2_ref, o_ref):
    TB, S, D = x_ref.shape
    x = x_ref[...]                                      # (TB, S, D), input dtype

    # attention_network[0:2]: Linear(D->A) + Tanh, fused across the whole tile
    # as one (TB*S, D) @ (D, A) MXU stream with f32 accumulation.  The merge
    # reshape is free when S % 8 == 0 (no (8,128) tile boundary crossed).
    # TODO(synk): for S % 8 != 0 Mosaic materializes a tile copy here; pad S in
    # the wrapper if such shapes show up in production.
    x2d = x.reshape(TB * S, D)
    h = jnp.tanh(
        jnp.dot(x2d, w1_ref[...], preferred_element_type=jnp.float32)
        + b1_ref[...]                                   # (1, A) broadcast
    )                                                   # (TB*S, A) f32

    # attention_network[2]: Linear(A->1) without bias (softmax shift-invariant).
    # Degenerate N=1 matmul -> VPU multiply + lane (XLU) reduce instead of MXU.
    s = jnp.sum(h * w2_ref[...], axis=-1, keepdims=True)        # (TB*S, 1) f32
    # Single small relayout to a lane-dense (TB, S) layout so the softmax
    # (max / exp / sum / rcp) runs at full 128-lane density.
    s = s.reshape(TB, S)

    # softmax over the sequence axis, independently per batch row
    s = s - jnp.max(s, axis=-1, keepdims=True)
    e = jnp.exp(s)
    w = e * pl.reciprocal(jnp.sum(e, axis=-1, keepdims=True), approx=True)

    if x.dtype == jnp.float32:
        # exact f32 VPU multiply + S-reduction (no extra copy: x is already f32)
        acc = jnp.sum(x * w.reshape(TB, S, 1), axis=1)           # (TB, D) f32
    else:
        # sub-f32 inputs: batched MXU matvec with f32 accumulation; avoids
        # materializing an f32 copy of the whole tile (the MXU has huge slack,
        # the kernel is HBM-bound).  Weights are cast to x.dtype.
        acc = jnp.einsum(
            "bqs,bsd->bqd",
            w.astype(x.dtype).reshape(TB, 1, S),
            x,
            preferred_element_type=jnp.float32,
        ).reshape(TB, D)
    o_ref[...] = acc.astype(o_ref.dtype)


def _vmem_params():
    """Generation-aware scoped-VMEM limit and per-step live-set budget."""
    try:
        cap = int(pltpu.get_tpu_info().vmem_capacity_bytes)
    except Exception:
        cap = 64 * 1024 * 1024          # assume the smallest (v7x per-TC VMEM)
    limit = min(cap * 3 // 4, 96 * 1024 * 1024)   # v7x: 48 MiB, v5e/v6e: 96 MiB
    budget = limit // 2                           # headroom for compiler scratch
    return int(limit), int(budget)


def _pick_tb(B, S, D, A, x_dtype, budget):
    """Batch rows per grid step: largest sublane-friendly (multiple-of-8) tile
    whose per-step live set fits `budget`, nudged to an even grid count."""
    if B <= 8:
        return B                        # block equals the full batch dim -> legal
    in_sz = jnp.dtype(x_dtype).itemsize
    per_row = 2 * S * D * in_sz         # double-buffered x block
    if S % 8 != 0:
        per_row += S * D * in_sz        # reshape copy for the fused first matmul
    if in_sz == 4:
        per_row += S * D * 4            # x*w product in the f32 VPU path
    per_row += 2 * S * A * 4            # h and h*w2 (f32)
    per_row += 8 * S * 4                # scores / exp / weights / relayouts
    per_row += 2 * D * in_sz + D * 4    # double-buffered output + f32 acc
    tb_cap = (B // 8) * 8               # never exceed B (rounded to sublanes)
    tb = int(budget // max(per_row, 1)) // 8 * 8
    tb = max(8, min(tb, 256, tb_cap))
    # v7x has two TensorCores: prefer an even number of parallel grid steps so
    # both cores get balanced work (search downward within budget).
    nb = pl.cdiv(B, tb)
    if nb > 1 and nb % 2 == 1:
        for cand in range(tb - 8, 7, -8):
            if pl.cdiv(B, cand) % 2 == 0:
                tb = cand
                break
    return tb


@jax.jit
def global_attention_pooling(x, w1, b1, w2, b2=None):
    """x: (B, S, D); w1: (D, A); b1: (A,); w2: (A, 1); b2: (1,) (unused: it is
    a constant shift of the scores, which softmax is invariant to)."""
    del b2
    B, S, D = x.shape
    A = w1.shape[1]

    vmem_limit, budget = _vmem_params()
    TB = _pick_tb(B, S, D, A, x.dtype, budget)
    # No jnp.pad: the last block may over-run B.  Out-of-range input rows are
    # per-row independent garbage and their output rows are masked by Pallas.
    n_blocks = pl.cdiv(B, TB)

    w1c = w1.astype(x.dtype)                          # MXU wants matching dtypes
    b1_2d = b1.reshape(1, A).astype(jnp.float32)
    w2_row = w2.reshape(1, A).astype(jnp.float32)     # (A,1) column -> (1,A) row

    # NOTE: if D % 128 != 0 the (TB, D) output store is a masked vst; padding D
    # would require copying x in HBM, which costs more than it saves.
    return pl.pallas_call(
        _gap_kernel,
        out_shape=jax.ShapeDtypeStruct((B, D), x.dtype),
        grid_spec=pltpu.PrefetchScalarGridSpec(
            num_scalar_prefetch=0,
            grid=(n_blocks,),
            in_specs=[
                pl.BlockSpec((TB, S, D), lambda b: (b, 0, 0)),   # x tile
                pl.BlockSpec((D, A), lambda b: (0, 0)),          # W1 (full)
                pl.BlockSpec((1, A), lambda b: (0, 0)),          # b1
                pl.BlockSpec((1, A), lambda b: (0, 0)),          # W2 as row vec
            ],
            out_specs=pl.BlockSpec((TB, D), lambda b: (b, 0)),
        ),
        compiler_params=pltpu.CompilerParams(
            dimension_semantics=("parallel",),
            vmem_limit_bytes=vmem_limit,
        ),
    )(x, w1c, b1_2d, w2_row)


def _reference(x, w1, b1, w2, b2):
    # Pure-JAX reference mirroring the PyTorch forward (b2 included; it is a
    # no-op under softmax but kept for fidelity).
    scores = jnp.tanh(x @ w1 + b1) @ w2 + b2            # (B, S, 1)
    weights = jax.nn.softmax(scores, axis=1)            # softmax over seq
    return jnp.sum(x * weights, axis=1)                 # (B, D)


def _make_inputs(key, B, S, D, A, dtype=jnp.float32):
    kx, kw1, kb1, kw2, kb2 = jax.random.split(key, 5)
    x = jax.random.normal(kx, (B, S, D), dtype=jnp.float32).astype(dtype)
    lim1 = 1.0 / (D ** 0.5)
    w1 = jax.random.uniform(kw1, (D, A), minval=-lim1, maxval=lim1, dtype=jnp.float32)
    b1 = jax.random.uniform(kb1, (A,), minval=-lim1, maxval=lim1, dtype=jnp.float32)
    lim2 = 1.0 / (A ** 0.5)
    w2 = jax.random.uniform(kw2, (A, 1), minval=-lim2, maxval=lim2, dtype=jnp.float32)
    b2 = jax.random.uniform(kb2, (1,), minval=-lim2, maxval=lim2, dtype=jnp.float32)
    return x, w1, b1, w2, b2


if __name__ == "__main__":
    key = jax.random.PRNGKey(0)
    k1, k2, k3 = jax.random.split(key, 3)

    # Tolerance note: the EUP approximate reciprocal of the softmax denominator
    # carries ~2^-12 relative error, so f32 cases are checked at 2e-3 instead
    # of 2e-5; everything else on the f32 path is exact f32.

    # Case 1: module-spec-sized small inputs (batch=2, seq=8, input_dim=32,
    # attention_dim=16) -> single full-batch block.
    x, w1, b1, w2, b2 = _make_inputs(k1, B=2, S=8, D=32, A=16)
    out = jax.block_until_ready(global_attention_pooling(x, w1, b1, w2, b2))
    ref = _reference(x, w1, b1, w2, b2)
    assert out.shape == (2, 32), out.shape
    assert jnp.allclose(out, ref, atol=2e-3, rtol=2e-3), (
        f"case1 max err {jnp.max(jnp.abs(out - ref))}"
    )

    # Case 2: B=12 exercises TB=8 batch tiling with a ragged (unpadded) last
    # block and a 2-step parallel grid.
    x, w1, b1, w2, b2 = _make_inputs(k2, B=12, S=16, D=128, A=32)
    out = jax.block_until_ready(global_attention_pooling(x, w1, b1, w2, b2))
    ref = _reference(x, w1, b1, w2, b2)
    assert out.shape == (12, 128), out.shape
    assert jnp.allclose(out, ref, atol=2e-3, rtol=2e-3), (
        f"case2 max err {jnp.max(jnp.abs(out - ref))}"
    )

    # Case 3: bf16 input exercises the no-f32-upcast MXU weighted-sum path
    # (looser tolerance: bf16 weights / bf16 matmul inputs vs f32 reference).
    x, w1, b1, w2, b2 = _make_inputs(k3, B=16, S=16, D=128, A=32,
                                     dtype=jnp.bfloat16)
    out = jax.block_until_ready(global_attention_pooling(x, w1, b1, w2, b2))
    ref = _reference(x.astype(jnp.float32), w1, b1, w2, b2)
    assert out.shape == (16, 128), out.shape
    err = jnp.max(jnp.abs(out.astype(jnp.float32) - ref))
    assert jnp.allclose(out.astype(jnp.float32), ref, atol=5e-2, rtol=5e-2), (
        f"case3 max err {err}"
    )

    print("KERNEL_OK")
</pallas_src>

<mosaic_0001>
module attributes {stable_mosaic.version = 11 : i64} {
  func.func @_gap_kernel(%arg0: i32, %arg1: memref<2x8x32xf32, #tpu.memory_space<vmem>>, %arg2: memref<32x16xf32, #tpu.memory_space<vmem>>, %arg3: memref<1x16xf32, #tpu.memory_space<vmem>>, %arg4: memref<1x16xf32, #tpu.memory_space<vmem>>, %arg5: memref<2x32xf32, #tpu.memory_space<vmem>>) attributes {dimension_semantics = [#tpu.dimension_semantics<parallel>], iteration_bounds = array<i64: 1>, scalar_prefetch = 0 : i64, scratch_operands = 0 : i64, tpu.core_type = #tpu.core_type<tc>, window_params = [{transform_indices = @transform_0, window_bounds = array<i64: 2, 8, 32>}, {pipeline_mode = #tpu.pipeline_mode<synchronous>, transform_indices = @transform_1, window_bounds = array<i64: 32, 16>}, {pipeline_mode = #tpu.pipeline_mode<synchronous>, transform_indices = @transform_2, window_bounds = array<i64: 1, 16>}, {pipeline_mode = #tpu.pipeline_mode<synchronous>, transform_indices = @transform_3, window_bounds = array<i64: 1, 16>}, {transform_indices = @transform_4, window_bounds = array<i64: 2, 32>}]} {
    %c0 = arith.constant 0 : index
    %c0_0 = arith.constant 0 : index
    %c0_1 = arith.constant 0 : index
    %0 = vector.load %arg1[%c0, %c0_0, %c0_1] : memref<2x8x32xf32, #tpu.memory_space<vmem>>, vector<2x8x32xf32>
    %1 = vector.shape_cast %0 : vector<2x8x32xf32> to vector<16x32xf32>
    %c0_2 = arith.constant 0 : index
    %c0_3 = arith.constant 0 : index
    %2 = vector.load %arg2[%c0_2, %c0_3] : memref<32x16xf32, #tpu.memory_space<vmem>>, vector<32x16xf32>
    %cst = arith.constant dense<0.000000e+00> : vector<16x16xf32>
    %3 = tpu.matmul %1, %2, %cst {dimension_numbers = #tpu.dot_dimension_numbers<[1], [0], [0], [1], [0, 0, 1, 1], [], []>} : vector<16x32xf32>, vector<32x16xf32>, vector<16x16xf32> -> vector<16x16xf32>
    %c0_4 = arith.constant 0 : index
    %c0_5 = arith.constant 0 : index
    %4 = vector.load %arg3[%c0_4, %c0_5] : memref<1x16xf32, #tpu.memory_space<vmem>>, vector<1x16xf32>
    %5 = vector.broadcast %4 : vector<1x16xf32> to vector<16x16xf32>
    %6 = arith.addf %3, %5 : vector<16x16xf32>
    %7 = math.tanh %6 : vector<16x16xf32>
    %c0_6 = arith.constant 0 : index
    %c0_7 = arith.constant 0 : index
    %8 = vector.load %arg4[%c0_6, %c0_7] : memref<1x16xf32, #tpu.memory_space<vmem>>, vector<1x16xf32>
    %9 = vector.broadcast %8 : vector<1x16xf32> to vector<16x16xf32>
    %10 = arith.mulf %7, %9 : vector<16x16xf32>
    %cst_8 = arith.constant dense<0.000000e+00> : vector<16xf32>
    %11 = vector.multi_reduction <add>, %10, %cst_8 [1] : vector<16x16xf32> to vector<16xf32>
    %12 = vector.shape_cast %11 : vector<16xf32> to vector<16x1xf32>
    %13 = vector.shape_cast %12 : vector<16x1xf32> to vector<2x8xf32>
    %cst_9 = arith.constant dense<0xFF800000> : vector<2xf32>
    %14 = vector.multi_reduction <maximumf>, %13, %cst_9 [1] : vector<2x8xf32> to vector<2xf32>
    %15 = vector.shape_cast %14 : vector<2xf32> to vector<2x1xf32>
    %16 = vector.broadcast %15 : vector<2x1xf32> to vector<2x8xf32>
    %17 = arith.subf %13, %16 : vector<2x8xf32>
    %18 = math.exp %17 : vector<2x8xf32>
    %cst_10 = arith.constant dense<0.000000e+00> : vector<2xf32>
    %19 = vector.multi_reduction <add>, %18, %cst_10 [1] : vector<2x8xf32> to vector<2xf32>
    %20 = vector.shape_cast %19 : vector<2xf32> to vector<2x1xf32>
    %21 = tpu.reciprocal %20 {approx = true} : vector<2x1xf32> -> vector<2x1xf32>
    %22 = vector.broadcast %21 : vector<2x1xf32> to vector<2x8xf32>
    %23 = arith.mulf %18, %22 : vector<2x8xf32>
    %24 = vector.shape_cast %23 : vector<2x8xf32> to vector<2x8x1xf32>
    %25 = vector.broadcast %24 : vector<2x8x1xf32> to vector<2x8x32xf32>
    %26 = arith.mulf %0, %25 : vector<2x8x32xf32>
    %cst_11 = arith.constant dense<0.000000e+00> : vector<2x32xf32>
    %27 = vector.multi_reduction <add>, %26, %cst_11 [1] : vector<2x8x32xf32> to vector<2x32xf32>
    %c0_12 = arith.constant 0 : index
    %c0_13 = arith.constant 0 : index
    %28 = vector.load %arg5[%c0_12, %c0_13] : memref<2x32xf32, #tpu.memory_space<vmem>>, vector<2x32xf32>
    tpu.vector_store %arg5[%c0_12, %c0_13], %27 {strides = array<i32>} : memref<2x32xf32, #tpu.memory_space<vmem>>, vector<2x32xf32>,
    return
  }
  func.func @transform_0(%arg0: i32) -> (i32, i32, i32) {
    %c0_i32 = arith.constant 0 : i32
    %c0_i32_0 = arith.constant 0 : i32
    %c0_i32_1 = arith.constant 0 : i32
    return %arg0, %c0_i32, %c0_i32_0 : i32, i32, i32
  }
  func.func @transform_1(%arg0: i32) -> (i32, i32) {
    %c0_i32 = arith.constant 0 : i32
    %c0_i32_0 = arith.constant 0 : i32
    %c0_i32_1 = arith.constant 0 : i32
    return %c0_i32, %c0_i32_0 : i32, i32
  }
  func.func @transform_2(%arg0: i32) -> (i32, i32) {
    %c0_i32 = arith.constant 0 : i32
    %c0_i32_0 = arith.constant 0 : i32
    %c0_i32_1 = arith.constant 0 : i32
    return %c0_i32, %c0_i32_0 : i32, i32
  }
  func.func @transform_3(%arg0: i32) -> (i32, i32) {
    %c0_i32 = arith.constant 0 : i32
    %c0_i32_0 = arith.constant 0 : i32
    %c0_i32_1 = arith.constant 0 : i32
    return %c0_i32, %c0_i32_0 : i32, i32
  }
  func.func @transform_4(%arg0: i32) -> (i32, i32) {
    %c0_i32 = arith.constant 0 : i32
    %c0_i32_0 = arith.constant 0 : i32
    return %arg0, %c0_i32 : i32, i32
  }
}

</mosaic_0001>

<bundles_post_ra>
// kernel: global_attention_pooling.1
= control target key start
LH: loop header
LB: loop body
LE: loop exit
PB: predicated region body
PF: predicated region fallthrough
CT: control target
= control target key end

     0   :  { %s288_s0 = inlined_call_operand.vmem [shape: f32[2,8,32], index: 0, kind: input, shape index: {}]   ;;  %s289_s1 = inlined_call_operand.vmem [shape: f32[32,16], index: 1, kind: input, shape index: {}]   ;;  %s290_s2 = inlined_call_operand.vmem [shape: f32[1,16], index: 2, kind: input, shape index: {}]   ;;  %s291_s3 = inlined_call_operand.vmem [shape: f32[1,16], index: 3, kind: input, shape index: {}]   ;;  %s292_s4 = inlined_call_operand.hbm [shape: f32[2,32], index: 4, kind: output, shape index: {}]  }
   0x1   :  { %v23_v0 = vld [vmem:[%s289_s1 + $0x18] sm:$0xff]  ;;  %v22_v1 = vld [vmem:[%s289_s1 + $0x10] sm:$0xff]  ;;  %v21_v2 = vld [vmem:[%s289_s1 + $0x8] sm:$0xff] }
   0x2   :  { %47 = vmatpush.msra.mxu0 %v23_v0  ;;  %170 = vmatpush.msra.mxu1 %v23_v0 }
   0x4   :  { %48 = vmatpush.msra.mxu0 %v22_v1  ;;  %171 = vmatpush.msra.mxu1 %v22_v1 }
   0x5   :  { %9 = vsyncpa [#allocation3], 0  ;;  %v20_v3 = vld [vmem:[%s289_s1] sm:$0xff]  ;;  %vm28_vm0 = vcmask 261120   ;;  %v264_v5 = vld [vmem:[%s288_s0 + $0x8] sm:$0xff]  ;;  %vm66_vm1 = vcmask 130048   ;;  %v75_v19 = vlaneseq }
   0x6   :  { %49 = vmatpush.msra.mxu0 %v21_v2  ;;  %v259_v4 = vld [vmem:[%s288_s0] sm:$0xff]  ;;  %172 = vmatpush.msra.mxu1 %v21_v2  ;;  %vm79_vm2 = vcmask 1041409   ;;  %vm82_vm3 = vcmask 58368   ;;  %v217_v26 = vmov 0   ;;  %s159_s5 = sshll.u32 %s292_s4, 4  ;;  %vm150_vm4 = vcmask 254976   ;;  %s160_s5 = int_to_ptr.hbm [resolvable:$true] %s159_s5 }
   0x7   :  { %v179_v6 = vld [vmem:[%s290_s2] ss:$0 sm:$0xff]  ;;  %v76_v20 = vand.u32 127, %v75_v19  ;;  %177 = vset.pattern.permute.xlu2 %v217_v26  ;;  %176 = vset.pattern.permute.xlu1 %v217_v26  ;;  %s218_s2 = smov [#allocation2]  }
   0x8   :  { %50 = vmatpush.msra.mxu0 %v20_v3  ;;  %173 = vmatpush.msra.mxu1 %v20_v3  ;;  %v180_v11 = vld [vmem:[%s291_s3] ss:$0 sm:$0xff]  ;;  %s157_s3 = sshll.u32 %s218_s2, 4  ;;  %s158_s3 = int_to_ptr.vmem [resolvable:$true] %s157_s3 }
   0x9   :  { %168 = vmatmul.msk.f32.vlgmr.msra.gmra.mxu0 %vm28_vm0, %v259_v4  ;;  %169 = vmatmul.msk.f32.vlgmr.msra.gmra.mxu1 %vm28_vm0, %v264_v5 }
   0xa   :  { %178 = vset.pattern.permute.xlu0 %v217_v26 }
  0x86   :  { %v52_v7 = vpop.f32.mrf.mxu0  ;;  %v55_v8 = vpop.f32.mrf.mxu1 }
  0x87   :  { %v53_v9 = vadd.f32 %v179_v6, %v52_v7  ;;  %v56_v10 = vadd.f32 %v179_v6, %v55_v8 }
  0x89   :  { %181 = vtanh.f32 %v53_v9 }
  0x8a   :  { %183 = vtanh.f32 %v56_v10 }
  0x8f   :  { %v182_v12 = vpop.eup %181 }
  0x90   :  { %v64_v13 = vmul.f32 %v182_v12, %v180_v11  ;;  %v184_v14 = vpop.eup %183 }
  0x91   :  { %v65_v16 = vmul.f32 %v184_v14, %v180_v11 }
  0x92   :  { %v67_v15 = vsel %vm66_vm1, %v64_v13, 0.0 }
  0x93   :  { %68 = vadd.xlane.f32.xlu0 %v67_v15  ;;  %v70_v17 = vsel %vm66_vm1, %v65_v16, 0.0 }
  0x9b   :  { %71 = vadd.xlane.f32.xlu0 %v70_v17 }
 0x106   :  { %v69_v18 = vpop.xlane.xlu0 %68 }
 0x107   :  { %v77_v22 = vperm.slane %v69_v18, %v76_v20 }
 0x10e   :  { %v72_v21 = vpop.xlane.xlu0 %71 }
 0x10f   :  { %v78_v23 = vperm.slane %v72_v21, %v76_v20 }
 0x111   :  { %v80_v24 = vsel %vm79_vm2, %v78_v23, %v77_v22 }
 0x112   :  { %v83_v25 = vsel %vm82_vm3, %v80_v24, -inf }
 0x113   :  { %84 = vmax.xlane.f32.xlu1 %v83_v25 }
 0x186   :  { %v85_v27 = vpop.xlane.xlu1 %84 }
 0x187   :  { %v87_v28 = vperm.slane %v85_v27, 0  ;;  %v88_v29 = vperm.slane %v85_v27, 1 }
 0x189   :  { %v91_v30 = vsub.f32 %v69_v18, %v87_v28  ;;  %v92_v31 = vsub.f32 %v72_v21, %v88_v29 }
 0x18b   :  { %v93_v32 = vmul.f32 1.442695, %v91_v30  ;;  %v95_v33 = vmul.f32 1.442695, %v92_v31 }
 0x18d   :  { %185 = vpow2.f32 %v93_v32 }
 0x18e   :  { %187 = vpow2.f32 %v95_v33 }
 0x193   :  { %v186_v34 = vpop.eup %185 }
 0x194   :  { %v188_v35 = vpop.eup %187  ;;  %100 = vperm.xlu1 %176, %v186_v34  }
 0x195   :  { %103 = vperm.xlu2 %177, %v188_v35  }
 0x1ef   :  { %v104_v36 = vpop.permute.xlu2 %103 }
 0x1f0   :  { %v106_v38 = vperm.slane %v104_v36, %v76_v20 }
 0x206   :  { %v101_v37 = vpop.permute.xlu1 %100 }
 0x207   :  { %v105_v39 = vperm.slane %v101_v37, %v76_v20 }
 0x209   :  { %v107_v40 = vsel %vm79_vm2, %v106_v38, %v105_v39 }
 0x20a   :  { %v109_v41 = vsel %vm82_vm3, %v107_v40, 0.0 }
 0x20b   :  { %110 = vadd.xlane.f32.xlu2 %v109_v41 }
 0x27e   :  { %v111_v42 = vpop.xlane.xlu2 %110 }
 0x27f   :  { %189 = vrcp.f32 %v111_v42 }
 0x285   :  { %v190_v43 = vpop.eup %189 }
 0x286   :  { %v115_v44 = vperm.slane %v190_v43, 1  ;;  %v114_v45 = vperm.slane %v190_v43, 0 }
 0x288   :  { %v119_v46 = vmul.f32 %v188_v35, %v115_v44  ;;  %v118_v47 = vmul.f32 %v186_v34, %v114_v45 }
 0x28a   :  { %127 = vperm.xlu1 %176, %v119_v46   ;;  %122 = vperm.xlu0 %178, %v118_v47  }
 0x2fc   :  { %v128_v48 = vpop.permute.xlu1 %127  ;;  %v123_v49 = vpop.permute.xlu0 %122 }
 0x2fd   :  { %v131_v50 = vmul.f32 %v128_v48, %v264_v5  ;;  %v130_v51 = vmul.f32 %v123_v49, %v259_v4 }
 0x2ff   :  { %v139_v52 = vsel %vm28_vm0, %v131_v50, 0.0  ;;  %v132_v53 = vsel %vm28_vm0, %v130_v51, 0.0 }
 0x300   :  { %v140_v54 = vrot.slane %v139_v52, 4  ;;  %v133_v55 = vrot.slane %v132_v53, 4 }
 0x302   :  { %v141_v56 = vadd.f32 %v140_v54, %v139_v52  ;;  %v134_v57 = vadd.f32 %v133_v55, %v132_v53 }
 0x304   :  { %v142_v58 = vrot.slane %v141_v56, 2  ;;  %v135_v59 = vrot.slane %v134_v57, 2 }
 0x306   :  { %v143_v60 = vadd.f32 %v142_v58, %v141_v56  ;;  %v136_v61 = vadd.f32 %v135_v59, %v134_v57 }
 0x308   :  { %v144_v62 = vrot.slane %v143_v60, 1  ;;  %v137_v63 = vrot.slane %v136_v61, 1 }
 0x30a   :  { %v145_v0 = vadd.f32 %v144_v62, %v143_v60  ;;  %v138_v1 = vadd.f32 %v137_v63, %v136_v61 }
 0x30c   :  { %v148_v2 = vsel %vm79_vm2, %v145_v0, %v138_v1 }
 0x30d   :  { %151 = vst.msk [vmem:[#allocation2] sm:$0x3] %vm150_vm4, %v148_v2 }
 0x30e   :  { %162 = dma.vmem_to_hbm [thread:$0]  %s158_s3, 32, %s160_s5, [#allocation3]  }
 0x30f   :  { %215 = dma.done.wait [#allocation3], 32  }
 0x310   :  { %216 = vsyncadd [#allocation3], 4294967264 }
 0x311   :  { %167 = vsyncpa [#allocation3], 1 }

</bundles_post_ra>
